<compile_context>
chip_gen: v7x
topology: tpu7x:2x2x1
jax: 0.10.0
libtpu: 0.0.40
codegen_flags: <defaults>
</compile_context>

<pallas_src>
import functools

import jax
import jax.numpy as jnp
from jax import lax
from jax.experimental import pallas as pl
from jax.experimental.pallas import tpu as pltpu


def _mix32(h):
    """Cheap 32-bit integer mixer (int32 only; shifts masked => logical-shift hash)."""
    h = (h ^ ((h >> 16) & 0xFFFF)) * jnp.int32(0x45D9F3B)
    h = (h ^ ((h >> 16) & 0xFFFF)) * jnp.int32(0x45D9F3B)
    h = h ^ ((h >> 16) & 0xFFFF)
    return h


def _conv_relu_stats_kernel(x_ref, w_ref, b_ref, y_ref, stats_ref, *,
                            K, dilation, pad_l, pad_r, bn, L):
    """Dilated Conv1d + bias + ReLU for `bn` batch elements; accumulates BN stats.

    Lane-dense layout (L on lanes, channels on sublanes):
      x_ref:     (bn, C_in, L)     input block
      w_ref:     (C_out, K*C_in)   folded conv weights (tap-major columns)
      b_ref:     (C_out, 1)        bias
      y_ref:     (bn, C_out, L)    conv+ReLU output block
      stats_ref: (C_out, 2)        resident accumulator: [sum, sum of squares]
    """
    C_in = x_ref.shape[1]

    # 'same' padding along L done in VMEM, then im2col over the K dilated taps.
    # All bn elements are concatenated on the lane axis -> ONE wide MXU matmul.
    cols = []
    for i in range(bn):                                   # bn is a static constant
        x = x_ref[i]                                      # (C_in, L)
        parts = []
        if pad_l > 0:
            parts.append(jnp.zeros((C_in, pad_l), x.dtype))
        parts.append(x)
        if pad_r > 0:
            parts.append(jnp.zeros((C_in, pad_r), x.dtype))
        xp = jnp.concatenate(parts, axis=1) if len(parts) > 1 else x  # (C_in, L+pad)
        taps = [xp[:, t * dilation: t * dilation + L] for t in range(K)]
        cols.append(jnp.concatenate(taps, axis=0) if K > 1 else taps[0])  # (K*C_in, L)
    xs = jnp.concatenate(cols, axis=1) if bn > 1 else cols[0]             # (K*C_in, bn*L)

    y = jnp.dot(w_ref[...], xs, preferred_element_type=jnp.float32) + b_ref[...]
    y = jnp.maximum(y, 0.0)                                               # ReLU, (C_out, bn*L)

    for i in range(bn):
        y_ref[i] = y[:, i * L:(i + 1) * L].astype(y_ref.dtype)

    # BatchNorm batch statistics: accumulate per-channel sum / sumsq across the grid.
    @pl.when(pl.program_id(0) == 0)
    def _init():
        stats_ref[...] = jnp.zeros_like(stats_ref)

    s1 = jnp.sum(y, axis=1, keepdims=True)                                # (C_out, 1)
    s2 = jnp.sum(y * y, axis=1, keepdims=True)                            # (C_out, 1)
    stats_ref[...] += jnp.concatenate([s1, s2], axis=1)


def _bn_dropout_kernel(seed_ref, y_ref, scale_ref, shift_ref, o_ref, *, drop_p, bn):
    """Precomputed BN affine transform + Dropout(p) on a block of batch elements.

      y_ref / o_ref: (bn, C_out, L);  scale_ref / shift_ref: (1, C_out, 1)
    """
    _, C_out, L = y_ref.shape
    z = y_ref[...] * scale_ref[...] + shift_ref[...]

    # Dropout (training mode, inverted scaling) with a counter-based hash PRNG keyed
    # on (seed, global element index) -> independent, tiling-invariant stream.
    # TODO(synk): RNG stream necessarily differs from torch.nn.Dropout's CPU/CUDA RNG.
    shape = (bn, C_out, L)
    gb = pl.program_id(0) * bn + lax.broadcasted_iota(jnp.int32, shape, 0)
    ch = lax.broadcasted_iota(jnp.int32, shape, 1)
    col = lax.broadcasted_iota(jnp.int32, shape, 2)
    idx = (gb * C_out + ch) * L + col
    h = _mix32(idx ^ _mix32(seed_ref[0]))
    u = (h & 0x00FFFFFF).astype(jnp.float32) * (1.0 / 16777216.0)         # uniform [0, 1)
    keep = (u >= drop_p).astype(jnp.float32)
    o_ref[...] = (z * keep * (1.0 / (1.0 - drop_p))).astype(o_ref.dtype)


def _largest_divisor_block(n, per_elem_bytes, budget_bytes, cap=16):
    """Largest divisor of n (<= cap) whose per-step tile fits the VMEM budget."""
    best = 1
    for d in range(1, min(n, cap) + 1):
        if n % d == 0 and d * per_elem_bytes <= budget_bytes:
            best = d
    return best


def dilated_conv_layer_forward(x, w, b, gamma, beta, seed, *, dilation,
                               eps=1e-5, drop_p=0.2):
    """Training-mode forward of DilatedConvLayer.

    x: (N, C_in, L) f32 (PyTorch NCL layout, used natively - no transposes).
    w: (C_out, C_in, K); b/gamma/beta: (C_out,).  Returns (N, C_out, L) f32.
    """
    N, C_in, L = x.shape
    C_out, _, K = w.shape

    # PyTorch padding='same' (stride 1): total = dilation*(K-1), left = total//2.
    total_pad = dilation * (K - 1)
    pad_l = total_pad // 2
    pad_r = total_pad - pad_l

    # Fold (C_out, C_in, K) -> (C_out, K*C_in); columns ordered (tap, channel) to
    # match the in-kernel im2col stacking.
    w2 = jnp.transpose(w, (0, 2, 1)).reshape(C_out, K * C_in).astype(jnp.float32)
    b2 = b.reshape(C_out, 1).astype(jnp.float32)
    x = x.astype(jnp.float32)

    vmem_cap = 32 * 1024 * 1024  # safe scoped-VMEM budget on v5e/v6e/v7x
    tile_budget = 4 * 1024 * 1024

    # ---- Pass 1: dilated conv + bias + ReLU, plus per-channel BN statistics. ----
    # Grid over batch blocks; BlockSpec auto-pipelines the x / y tiles while the small
    # stats block stays resident in VMEM ("arbitrary" axis, init on step 0).
    per_elem1 = 4 * L * (3 * C_in + 2 * K * C_in + 3 * C_out)
    bn1 = _largest_divisor_block(N, per_elem1, tile_budget)
    kernel1 = functools.partial(_conv_relu_stats_kernel, K=K, dilation=dilation,
                                pad_l=pad_l, pad_r=pad_r, bn=bn1, L=L)
    y, stats = pl.pallas_call(
        kernel1,
        grid=(N // bn1,),
        out_shape=(jax.ShapeDtypeStruct((N, C_out, L), jnp.float32),
                   jax.ShapeDtypeStruct((C_out, 2), jnp.float32)),
        in_specs=[
            pl.BlockSpec((bn1, C_in, L), lambda n: (n, 0, 0)),     # x block
            pl.BlockSpec((C_out, K * C_in), lambda n: (0, 0)),     # folded weights
            pl.BlockSpec((C_out, 1), lambda n: (0, 0)),            # bias
        ],
        out_specs=(
            pl.BlockSpec((bn1, C_out, L), lambda n: (n, 0, 0)),    # conv+ReLU output
            pl.BlockSpec((C_out, 2), lambda n: (0, 0)),            # resident stats acc
        ),
        compiler_params=pltpu.CompilerParams(
            dimension_semantics=("arbitrary",), vmem_limit_bytes=vmem_cap),
    )(x, w2, b2)

    # ---- Tiny (C_out,) finalize of the BN statistics (negligible XLA work). ----
    count = jnp.float32(N * L)
    mean = stats[:, 0] / count
    var = jnp.maximum(stats[:, 1] / count - mean * mean, 0.0)   # biased, like torch BN
    scale = gamma.astype(jnp.float32) * lax.rsqrt(var + eps)
    shift = beta.astype(jnp.float32) - mean * scale
    # TODO(synk): PyTorch training-mode BN also updates running_mean/running_var as a
    # side effect; those buffers are not modeled here (forward output is unaffected).

    # ---- Pass 2: normalize + Dropout(0.2). Batch blocks are independent -> "parallel"
    # grid axis (lets v7x split blocks across its two TensorCores). ----
    per_elem2 = 4 * L * C_out * 6
    bn2 = _largest_divisor_block(N, per_elem2, tile_budget)
    kernel2 = functools.partial(_bn_dropout_kernel, drop_p=drop_p, bn=bn2)
    out = pl.pallas_call(
        kernel2,
        grid=(N // bn2,),
        out_shape=jax.ShapeDtypeStruct((N, C_out, L), jnp.float32),
        in_specs=[
            pl.BlockSpec(memory_space=pltpu.MemorySpace.SMEM),         # seed scalar
            pl.BlockSpec((bn2, C_out, L), lambda n: (n, 0, 0)),        # y block
            pl.BlockSpec((1, C_out, 1), lambda n: (0, 0, 0)),          # BN scale
            pl.BlockSpec((1, C_out, 1), lambda n: (0, 0, 0)),          # BN shift
        ],
        out_specs=pl.BlockSpec((bn2, C_out, L), lambda n: (n, 0, 0)),
        compiler_params=pltpu.CompilerParams(
            dimension_semantics=("parallel",), vmem_limit_bytes=vmem_cap),
    )(jnp.asarray([seed], dtype=jnp.int32), y,
      scale.reshape(1, C_out, 1), shift.reshape(1, C_out, 1))

    return out


if __name__ == "__main__":
    # Module config (matches DilatedConvLayer(__init__) shapes)
    in_channels, out_channels, kernel_size, dilation = 4, 8, 3, 2
    N, L = 2, 16

    key = jax.random.PRNGKey(0)
    k_x, k_w, k_b = jax.random.split(key, 3)

    # Deterministic synthetic parameters (Conv1d default-init-like bounds).
    x = jax.random.normal(k_x, (N, in_channels, L), dtype=jnp.float32)
    fan_in = in_channels * kernel_size
    bound = 1.0 / (fan_in ** 0.5)
    w = jax.random.uniform(k_w, (out_channels, in_channels, kernel_size),
                           minval=-bound, maxval=bound, dtype=jnp.float32)
    b = jax.random.uniform(k_b, (out_channels,),
                           minval=-bound, maxval=bound, dtype=jnp.float32)
    gamma = jnp.ones((out_channels,), jnp.float32)    # BatchNorm1d weight init
    beta = jnp.zeros((out_channels,), jnp.float32)    # BatchNorm1d bias init

    out = dilated_conv_layer_forward(x, w, b, gamma, beta, seed=0,
                                     dilation=dilation)
    out = jax.block_until_ready(out)

    assert out.shape == (N, out_channels, L), out.shape
    assert bool(jnp.all(jnp.isfinite(out)))

    # Pure-JAX reference for conv + ReLU + training-mode BN; every kernel output
    # element must be either exactly dropped (0) or the BN output scaled by 1/(1-p).
    total_pad = dilation * (kernel_size - 1)
    pl_, pr_ = total_pad // 2, total_pad - total_pad // 2
    x_pad = jnp.pad(x, ((0, 0), (0, 0), (pl_, pr_)))
    y_ref = jnp.zeros((N, out_channels, L), jnp.float32) + b[None, :, None]
    for t in range(kernel_size):
        y_ref = y_ref + jnp.einsum(
            "oc,ncl->nol", w[:, :, t], x_pad[:, :, t * dilation:t * dilation + L])
    y_ref = jnp.maximum(y_ref, 0.0)
    mean_r = y_ref.mean(axis=(0, 2))
    var_r = ((y_ref - mean_r[None, :, None]) ** 2).mean(axis=(0, 2))
    z_ref = ((y_ref - mean_r[None, :, None]) * lax.rsqrt(var_r + 1e-5)[None, :, None]
             * gamma[None, :, None] + beta[None, :, None])
    kept_ref = z_ref / (1.0 - 0.2)
    ok = jnp.isclose(out, 0.0) | jnp.isclose(out, kept_ref, rtol=1e-4, atol=1e-4)
    assert bool(jnp.all(ok)), "kernel output mismatch vs pure-JAX reference"

    print("KERNEL_OK")
</pallas_src>

<mosaic_0001>
module attributes {stable_mosaic.version = 11 : i64} {
  func.func @_conv_relu_stats_kernel(%arg0: i32, %arg1: memref<2x4x16xf32, #tpu.memory_space<vmem>>, %arg2: memref<8x12xf32, #tpu.memory_space<vmem>>, %arg3: memref<8x1xf32, #tpu.memory_space<vmem>>, %arg4: memref<2x8x16xf32, #tpu.memory_space<vmem>>, %arg5: memref<8x2xf32, #tpu.memory_space<vmem>>) attributes {dimension_semantics = [#tpu.dimension_semantics<arbitrary>], iteration_bounds = array<i64: 1>, scalar_prefetch = 0 : i64, scratch_operands = 0 : i64, tpu.core_type = #tpu.core_type<tc>, window_params = [{transform_indices = @transform_0, window_bounds = array<i64: 2, 4, 16>}, {pipeline_mode = #tpu.pipeline_mode<synchronous>, transform_indices = @transform_1, window_bounds = array<i64: 8, 12>}, {pipeline_mode = #tpu.pipeline_mode<synchronous>, transform_indices = @transform_2, window_bounds = array<i64: 8, 1>}, {transform_indices = @transform_3, window_bounds = array<i64: 2, 8, 16>}, {pipeline_mode = #tpu.pipeline_mode<synchronous>, transform_indices = @transform_4, window_bounds = array<i64: 8, 2>}]} {
    %c0 = arith.constant 0 : index
    %c0_0 = arith.constant 0 : index
    %c0_1 = arith.constant 0 : index
    %0 = vector.load %arg1[%c0, %c0_0, %c0_1] : memref<2x4x16xf32, #tpu.memory_space<vmem>>, vector<1x4x16xf32>
    %1 = vector.shape_cast %0 : vector<1x4x16xf32> to vector<4x16xf32>
    %cst = arith.constant 0.000000e+00 : f32
    %2 = vector.broadcast %cst : f32 to vector<4x2xf32>
    %cst_2 = arith.constant 0.000000e+00 : f32
    %3 = vector.broadcast %cst_2 : f32 to vector<4x2xf32>
    %4 = tpu.concatenate %2, %1, %3 in 1 : vector<4x2xf32>, vector<4x16xf32>, vector<4x2xf32> -> vector<4x20xf32>
    %5 = vector.extract_strided_slice %4 {offsets = [0, 0], sizes = [4, 16], strides = [1, 1]} : vector<4x20xf32> to vector<4x16xf32>
    %6 = vector.extract_strided_slice %4 {offsets = [0, 2], sizes = [4, 16], strides = [1, 1]} : vector<4x20xf32> to vector<4x16xf32>
    %7 = vector.extract_strided_slice %4 {offsets = [0, 4], sizes = [4, 16], strides = [1, 1]} : vector<4x20xf32> to vector<4x16xf32>
    %8 = tpu.concatenate %5, %6, %7 in 0 : vector<4x16xf32>, vector<4x16xf32>, vector<4x16xf32> -> vector<12x16xf32>
    %c1 = arith.constant 1 : index
    %c0_3 = arith.constant 0 : index
    %c0_4 = arith.constant 0 : index
    %9 = vector.load %arg1[%c1, %c0_3, %c0_4] : memref<2x4x16xf32, #tpu.memory_space<vmem>>, vector<1x4x16xf32>
    %10 = vector.shape_cast %9 : vector<1x4x16xf32> to vector<4x16xf32>
    %cst_5 = arith.constant 0.000000e+00 : f32
    %11 = vector.broadcast %cst_5 : f32 to vector<4x2xf32>
    %cst_6 = arith.constant 0.000000e+00 : f32
    %12 = vector.broadcast %cst_6 : f32 to vector<4x2xf32>
    %13 = tpu.concatenate %11, %10, %12 in 1 : vector<4x2xf32>, vector<4x16xf32>, vector<4x2xf32> -> vector<4x20xf32>
    %14 = vector.extract_strided_slice %13 {offsets = [0, 0], sizes = [4, 16], strides = [1, 1]} : vector<4x20xf32> to vector<4x16xf32>
    %15 = vector.extract_strided_slice %13 {offsets = [0, 2], sizes = [4, 16], strides = [1, 1]} : vector<4x20xf32> to vector<4x16xf32>
    %16 = vector.extract_strided_slice %13 {offsets = [0, 4], sizes = [4, 16], strides = [1, 1]} : vector<4x20xf32> to vector<4x16xf32>
    %17 = tpu.concatenate %14, %15, %16 in 0 : vector<4x16xf32>, vector<4x16xf32>, vector<4x16xf32> -> vector<12x16xf32>
    %18 = tpu.concatenate %8, %17 in 1 : vector<12x16xf32>, vector<12x16xf32> -> vector<12x32xf32>
    %c0_7 = arith.constant 0 : index
    %c0_8 = arith.constant 0 : index
    %19 = vector.load %arg2[%c0_7, %c0_8] : memref<8x12xf32, #tpu.memory_space<vmem>>, vector<8x12xf32>
    %cst_9 = arith.constant dense<0.000000e+00> : vector<8x32xf32>
    %20 = tpu.matmul %19, %18, %cst_9 {dimension_numbers = #tpu.dot_dimension_numbers<[1], [0], [0], [1], [0, 0, 1, 1], [], []>} : vector<8x12xf32>, vector<12x32xf32>, vector<8x32xf32> -> vector<8x32xf32>
    %c0_10 = arith.constant 0 : index
    %c0_11 = arith.constant 0 : index
    %21 = vector.load %arg3[%c0_10, %c0_11] : memref<8x1xf32, #tpu.memory_space<vmem>>, vector<8x1xf32>
    %22 = vector.broadcast %21 : vector<8x1xf32> to vector<8x32xf32>
    %23 = arith.addf %20, %22 : vector<8x32xf32>
    %cst_12 = arith.constant 0.000000e+00 : f32
    %24 = vector.broadcast %cst_12 : f32 to vector<8x32xf32>
    %25 = arith.maximumf %23, %24 : vector<8x32xf32>
    %26 = vector.extract_strided_slice %25 {offsets = [0, 0], sizes = [8, 16], strides = [1, 1]} : vector<8x32xf32> to vector<8x16xf32>
    %c0_13 = arith.constant 0 : index
    %c0_14 = arith.constant 0 : index
    %c0_15 = arith.constant 0 : index
    %27 = vector.load %arg4[%c0_13, %c0_14, %c0_15] : memref<2x8x16xf32, #tpu.memory_space<vmem>>, vector<1x8x16xf32>
    %28 = vector.shape_cast %27 : vector<1x8x16xf32> to vector<8x16xf32>
    %29 = vector.shape_cast %26 : vector<8x16xf32> to vector<1x8x16xf32>
    tpu.vector_store %arg4[%c0_13, %c0_14, %c0_15], %29 {strides = array<i32>} : memref<2x8x16xf32, #tpu.memory_space<vmem>>, vector<1x8x16xf32>,
    %30 = vector.extract_strided_slice %25 {offsets = [0, 16], sizes = [8, 16], strides = [1, 1]} : vector<8x32xf32> to vector<8x16xf32>
    %c1_16 = arith.constant 1 : index
    %c0_17 = arith.constant 0 : index
    %c0_18 = arith.constant 0 : index
    %31 = vector.load %arg4[%c1_16, %c0_17, %c0_18] : memref<2x8x16xf32, #tpu.memory_space<vmem>>, vector<1x8x16xf32>
    %32 = vector.shape_cast %31 : vector<1x8x16xf32> to vector<8x16xf32>
    %33 = vector.shape_cast %30 : vector<8x16xf32> to vector<1x8x16xf32>
    tpu.vector_store %arg4[%c1_16, %c0_17, %c0_18], %33 {strides = array<i32>} : memref<2x8x16xf32, #tpu.memory_space<vmem>>, vector<1x8x16xf32>,
    %c0_i32 = arith.constant 0 : i32
    %34 = arith.cmpi eq, %arg0, %c0_i32 : i32
    %35 = arith.extui %34 : i1 to i32
    %c0_i32_19 = arith.constant 0 : i32
    %36 = arith.cmpi ne, %35, %c0_i32_19 : i32
    scf.if %36 {
      %cst_26 = arith.constant 0.000000e+00 : f32
      %46 = vector.broadcast %cst_26 : f32 to vector<8x2xf32>
      %c0_27 = arith.constant 0 : index
      %c0_28 = arith.constant 0 : index
      %47 = vector.load %arg5[%c0_27, %c0_28] : memref<8x2xf32, #tpu.memory_space<vmem>>, vector<8x2xf32>
      tpu.vector_store %arg5[%c0_27, %c0_28], %46 {strides = array<i32>} : memref<8x2xf32, #tpu.memory_space<vmem>>, vector<8x2xf32>,
    } else {
    }
    %cst_20 = arith.constant dense<0.000000e+00> : vector<8xf32>
    %37 = vector.multi_reduction <add>, %25, %cst_20 [1] : vector<8x32xf32> to vector<8xf32>
    %38 = vector.shape_cast %37 : vector<8xf32> to vector<8x1xf32>
    %39 = arith.mulf %25, %25 : vector<8x32xf32>
    %cst_21 = arith.constant dense<0.000000e+00> : vector<8xf32>
    %40 = vector.multi_reduction <add>, %39, %cst_21 [1] : vector<8x32xf32> to vector<8xf32>
    %41 = vector.shape_cast %40 : vector<8xf32> to vector<8x1xf32>
    %c0_22 = arith.constant 0 : index
    %c0_23 = arith.constant 0 : index
    %42 = vector.load %arg5[%c0_22, %c0_23] : memref<8x2xf32, #tpu.memory_space<vmem>>, vector<8x2xf32>
    %43 = tpu.concatenate %38, %41 in 1 : vector<8x1xf32>, vector<8x1xf32> -> vector<8x2xf32>
    %44 = arith.addf %42, %43 : vector<8x2xf32>
    %c0_24 = arith.constant 0 : index
    %c0_25 = arith.constant 0 : index
    %45 = vector.load %arg5[%c0_24, %c0_25] : memref<8x2xf32, #tpu.memory_space<vmem>>, vector<8x2xf32>
    tpu.vector_store %arg5[%c0_24, %c0_25], %44 {strides = array<i32>} : memref<8x2xf32, #tpu.memory_space<vmem>>, vector<8x2xf32>,
    return
  }
  func.func @transform_0(%arg0: i32) -> (i32, i32, i32) {
    %c0_i32 = arith.constant 0 : i32
    %c0_i32_0 = arith.constant 0 : i32
    %c0_i32_1 = arith.constant 0 : i32
    return %arg0, %c0_i32, %c0_i32_0 : i32, i32, i32
  }
  func.func @transform_1(%arg0: i32) -> (i32, i32) {
    %c0_i32 = arith.constant 0 : i32
    %c0_i32_0 = arith.constant 0 : i32
    %c0_i32_1 = arith.constant 0 : i32
    return %c0_i32, %c0_i32_0 : i32, i32
  }
  func.func @transform_2(%arg0: i32) -> (i32, i32) {
    %c0_i32 = arith.constant 0 : i32
    %c0_i32_0 = arith.constant 0 : i32
    %c0_i32_1 = arith.constant 0 : i32
    return %c0_i32, %c0_i32_0 : i32, i32
  }
  func.func @transform_3(%arg0: i32) -> (i32, i32, i32) {
    %c0_i32 = arith.constant 0 : i32
    %c0_i32_0 = arith.constant 0 : i32
    %c0_i32_1 = arith.constant 0 : i32
    return %arg0, %c0_i32, %c0_i32_0 : i32, i32, i32
  }
  func.func @transform_4(%arg0: i32) -> (i32, i32) {
    %c0_i32 = arith.constant 0 : i32
    %c0_i32_0 = arith.constant 0 : i32
    %c0_i32_1 = arith.constant 0 : i32
    return %c0_i32, %c0_i32_0 : i32, i32
  }
}

</mosaic_0001>

<bundles_post_ra>
// kernel: tpu_custom_call.1
= control target key start
LH: loop header
LB: loop body
LE: loop exit
PB: predicated region body
PF: predicated region fallthrough
CT: control target
= control target key end

     0   :  { %10 = vsyncpa [#allocation3], 0  ;;  %s383_s0 = inlined_call_operand.vmem [shape: f32[2,4,16], index: 0, kind: input, shape index: {}]   ;;  %s384_s1 = inlined_call_operand.hbm [shape: f32[8,12], index: 1, kind: input, shape index: {}]   ;;  %s385_s2 = inlined_call_operand.vmem [shape: f32[8,1], index: 2, kind: input, shape index: {}]   ;;  %s386_s3 = inlined_call_operand.hbm [shape: f32[2,8,16], index: 3, kind: output, shape index: {0}]   ;;  %s387_s4 = inlined_call_operand.vmem [shape: f32[8,2], index: 4, kind: output, shape index: {1}]  }
   0x1   :  { %11 = vsyncpa [#allocation4], 0  ;;  %s291_s15 = smov [#allocation2]   ;;  %s243_s19 = scalar_lea.hbm %s384_s1, 128 }
   0x2   :  { %s20_s16 = sshll.u32 %s291_s15, 4  ;;  %p244_p0 = scmp.ne.s32.totalorder %s384_s1, %s243_s19  ;;  %s21_s16 = int_to_ptr.vmem [resolvable:$true] %s20_s16 }
   0x3   :  { %p247_p1 = scmp.lt.u32.totalorder %s243_s19, %s384_s1 }
   0x5   :  { %p249_p2 = pnand %p247_p1, %p244_p0 }
   0x7   :  { %252 = shalt.err (!%p249_p2)
}
   0x8   :  { %s253_s24 = scalar_lea.vmem %s21_s16, 128  ;;  %p258_p4 = scmp.lt.s32.totalorder %s21_s16, %s21_s16 }
   0x9   :  { %p254_p3 = scmp.ne.s32.totalorder %s21_s16, %s253_s24  ;;  %p259_p5 = scmp.lt.s32.totalorder %s253_s24, %s253_s24 }
   0xb   :  { %p260_p6 = por %p259_p5, %p258_p4 }
   0xd   :  { %p261_p7 = pnand %p260_p6, %p254_p3 }
   0xf   :  { %264 = shalt.err (!%p261_p7)
}
  0x10   :  { %23 = dma.hbm_to_vmem [thread:$0]  %s384_s1, 128, %s21_s16, [#allocation3]  }
  0x11   :  { %287 = dma.done.wait [#allocation3], 128  }
  0x12   :  { %288 = vsyncadd [#allocation3], 4294967168  ;;  %v205_v0 = vld [vmem:[%s383_s0 + $0x4] sm:$0xf]  ;;  %s292_s29 = smov 2   ;;  %vm34_vm0 = vcmask 15360  }
  0x13   :  { %51 = vrot.lane.b32.xlu0 %v205_v0, %s292_s29  ;;  %v29_v1 = vld [vmem:[%s383_s0] sm:$0xf]  ;;  %vm36_vm1 = vcmask 146432   ;;  %s293_s1 = smov 126   ;;  %s294_s6 = smov 124   ;;  %v295_v10 = vmov 0.0|0.0  }
  0x14   :  { %218 = vmatprep.subr.bf16.mxu0 %v295_v10  ;;  %vm296_vm2 = vmmov 0   ;;  %v297_v12 = vmov 0.0   ;;  %vm46_vm3 = vcmask 1043456   ;;  %v75_v13 = vld [vmem:[%s385_s2] sm:$0xff]  ;;  %v298_v14 = vmov 0   ;;  %s299_s10 = smov 16  }
  0x15   :  { %215 = vmatprep.mubr.msk.f32.mxu0 %vm296_vm2, %v297_v12  ;;  %170 = vst.msk [vmem:[%s387_s4] sm:$0xff] %vm34_vm0, %v297_v12  ;;  %241 = vset.pattern.permute.xlu1 %v298_v14  ;;  %vm71_vm4 = vcmask 130048   ;;  %vm300_vm5 = vmmov 1   ;;  %v74_v27 = vld [vmem:[#allocation2] sm:$0xff]  ;;  %vm81_vm7 = vcmask 97280   ;;  %vm171_vm8 = vcmask 261120  }
  0x16   :  { %242 = vset.pattern.permute.xlu0 %v298_v14  ;;  %vm220_vm6 = vmpackc.low %vm46_vm3, %vm300_vm5  ;;  %s301_s2 = smov 112   ;;  %s302_s11 = smov [#allocation5]   ;;  %vm180_vm9 = vcmask 7168  }
  0x17   :  { %31 = vrot.lane.b32.xlu0 %v29_v1, %s292_s29  ;;  %s189_s12 = sshll.u32 %s302_s11, 4  ;;  %s190_s12 = int_to_ptr.vmem [resolvable:$true] %s189_s12 }
  0x18   :  { %s265_s17 = scalar_lea.vmem %s190_s12, 256  ;;  %p270_p9 = scmp.lt.s32.totalorder %s190_s12, %s190_s12 }
  0x19   :  { %p266_p8 = scmp.ne.s32.totalorder %s190_s12, %s265_s17  ;;  %p271_p10 = scmp.lt.s32.totalorder %s265_s17, %s265_s17 }
  0x1b   :  { %p272_p11 = por %p271_p10, %p270_p9 }
  0x1c   :  { %v179_v37 = vld [vmem:[%s387_s4] sm:$0xff] }
  0x1d   :  { %p273_p12 = pnand %p272_p11, %p266_p8 }
  0x85   :  { %v52_v2 = vpop.permute.xlu0 %51 }
  0x86   :  { %v54_v3 = vsel %vm34_vm0, 0.0, %v52_v2 }
  0x87   :  { %v55_v4 = vsel %vm36_vm1, %v54_v3, 0.0 }
  0x88   :  { %v57_v5 = vrot.slane %v55_v4, 4 }
  0x89   :  { %v32_v6 = vpop.permute.xlu0 %31 }
  0x8a   :  { %v35_v7 = vsel %vm34_vm0, 0.0, %v32_v6  ;;  %58 = vrot.lane.b32.xlu1 %v57_v5, %s293_s1 }
  0x8b   :  { %v37_v8 = vsel %vm36_vm1, %v35_v7, 0.0 }
  0x8c   :  { %v39_v9 = vrot.slane %v37_v8, 4 }
  0x8e   :  { %61 = vrot.lane.b32.xlu1 %v55_v4, %s294_s6  ;;  %40 = vrot.lane.b32.xlu0 %v39_v9, %s293_s1 }
  0x92   :  { %43 = vrot.lane.b32.xlu1 %v37_v8, %s294_s6 }
  0x96   :  { %78 = vperm.xlu1 %241, %v75_v13  }
  0xfc   :  { %v59_v11 = vpop.permute.xlu1 %58 }
  0xfd   :  { %v63_v15 = vsel %vm46_vm3, %v55_v4, %v59_v11 }
 0x100   :  { %v62_v16 = vpop.permute.xlu1 %61  ;;  %v41_v18 = vpop.permute.xlu0 %40 }
 0x101   :  { %v236_v17 = vpack.i.bf16 %v62_v16, %v63_v15  ;;  %v47_v22 = vsel %vm46_vm3, %v37_v8, %v41_v18 }
 0x103   :  { %237 = vrot.lane.b32.xlu0 %v236_v17, %s299_s10 }
 0x104   :  { %v44_v23 = vpop.permute.xlu1 %43 }
 0x115   :  { %v79_v28 = vpop.permute.xlu1 %78 }
 0x175   :  { %v238_v19 = vpop.permute.xlu0 %237 }
 0x176   :  { %v240_v20 = vunpack.i.h.bf16 %v238_v19  ;;  %v239_v21 = vunpack.i.l.bf16 %v238_v19 }
 0x178   :  { %v72_v24 = vsel %vm71_vm4, %v47_v22, %v239_v21  ;;  %v73_v25 = vsel %vm71_vm4, %v44_v23, %v240_v20 }
 0x179   :  { %v219_v26 = vpack.c.bf16 %v73_v25, %v72_v24 }
 0x17b   :  { %221 = vmatpush3.bf16.msk.msra.mxu0 %vm220_vm6, %v219_v26 }
 0x17e   :  { %216 = vmatmul.mubr.msk.f32.vlgmr.msra.gmra.mrb[0].mxu0 %vm81_vm7, %v74_v27 }
 0x251   :  { %v154_v29 = vpop.f32.mrb[0].mxu0 }
 0x252   :  { %v155_v30 = vadd.f32 %v154_v29, %v79_v28  ;;  %v217_v31 = vpop.f32.mrb[1].mxu0 }
 0x254   :  { %v158_v32 = vmax.f32 %v155_v30, 0.0 }
 0x256   :  { %159 = vst.msk [vmem:[#allocation5] sm:$0xff] %vm71_vm4, %v158_v32  ;;  %v172_v33 = vsel %vm171_vm8, %v158_v32, 0.0  ;;  %v175_v34 = vmul.f32 %v158_v32, %v158_v32 }
 0x257   :  { %173 = vadd.xlane.f32.xlu0 %v172_v33 }
 0x258   :  { %v176_v35 = vsel %vm171_vm8, %v175_v34, 0.0 }
 0x259   :  { %177 = vadd.xlane.f32.xlu1 %v176_v35 }
 0x26d   :  { %161 = vrot.lane.b32.xlu0 %v158_v32, %s301_s2 }
 0x2e4   :  { %v174_v36 = vpop.xlane.xlu0 %173 }
 0x2e6   :  { %v178_v38 = vpop.xlane.xlu1 %177 }
 0x2e7   :  { %v181_v39 = vsel %vm180_vm9, %v174_v36, %v178_v38 }
 0x2e8   :  { %v182_v40 = vadd.f32 %v181_v39, %v179_v37  ;;  %v162_v41 = vpop.permute.xlu0 %161 }
 0x2e9   :  { %165 = vst.msk [vmem:[#allocation5 + $0x8] sm:$0xff] %vm71_vm4, %v162_v41 }
 0x2ea   :  { %183 = vst.msk [vmem:[%s387_s4] sm:$0xff] %vm34_vm0, %v182_v40 }
 0x2eb   :  { %276 = shalt.err (!%p273_p12)
}
 0x2ec   :  { %s277_s20 = scalar_lea.hbm %s386_s3, 256 }
 0x2ed   :  { %p278_p13 = scmp.ne.s32.totalorder %s386_s3, %s277_s20  ;;  %p281_p0 = scmp.lt.u32.totalorder %s277_s20, %s386_s3 }
 0x2ef   :  { %p283_p1 = pnand %p281_p0, %p278_p13 }
 0x2f1   :  { %286 = shalt.err (!%p283_p1)
}
 0x2f2   :  { %s303_s4 = smov 128   ;;  %s304_s25 = smov 8  }
 0x2f3   :  { %195 = dma.vmem_to_hbm [thread:$0]  %s190_s12, 256, %s386_s3, [#allocation4], %s303_s4, %s303_s4, %s304_s25  }
 0x2f4   :  { %289 = dma.done.wait [#allocation4], 256  }
 0x2f5   :  { %290 = vsyncadd [#allocation4], 4294967040 }
 0x2f6   :  { %203 = vsyncpa [#allocation3], 1 }
 0x2f7   :  { %204 = vsyncpa [#allocation4], 1 }

</bundles_post_ra>
